<compile_context>
chip_gen: v5e
topology: v5e:2x2
jax: 0.10.0
libtpu: 0.0.40
codegen_flags: <defaults>
</compile_context>

<pallas_src>
import functools
import math

import jax
import jax.numpy as jnp
from jax.experimental import pallas as pl
from jax.experimental.pallas import tpu as pltpu


# ---------------------------------------------------------------------------
# Fused (folded) Pallas kernel: single matmul + bias.
# ---------------------------------------------------------------------------
def _sorter_kernel(x_ref, w_ref, b_ref, o_ref):
    # x_ref: (B, N*D)        flattened embeddings
    # w_ref: (N*D, R_pad)    folded effective weight (lane-dense padded)
    # b_ref: (1, R_pad)      folded effective bias (f32)
    # o_ref: (B, R_pad)      output (padding sliced off in the wrapper)
    w = w_ref[...]
    x = x_ref[...].astype(w.dtype)          # no-op when weights are f32
    acc = jnp.dot(x, w, preferred_element_type=jnp.float32)
    o_ref[...] = (acc + b_ref[...]).astype(o_ref.dtype)


def _pair_list(num_items):
    # Same ordering as the PyTorch code: row-major (i, j) pairs with i != j;
    # rep_1 carries item i, rep_2 carries item j.
    return tuple((i, j) for i in range(num_items)
                 for j in range(num_items) if i != j)


def _num_results(num_items):
    return math.factorial(num_items)


# ---------------------------------------------------------------------------
# Parameters
# ---------------------------------------------------------------------------
def init_params(key, dim_size, num_items):
    num_pair = num_items * (num_items - 1)
    num_results = _num_results(num_items)

    k1, k2, k3, k4 = jax.random.split(key, 4)
    # PyTorch nn.Linear default init: U(-1/sqrt(fan_in), 1/sqrt(fan_in))
    fan1 = 2 * dim_size
    w1 = jax.random.uniform(k1, (dim_size, 2 * dim_size), jnp.float32,
                            -1.0 / jnp.sqrt(fan1), 1.0 / jnp.sqrt(fan1))
    b1 = jax.random.uniform(k2, (dim_size,), jnp.float32,
                            -1.0 / jnp.sqrt(fan1), 1.0 / jnp.sqrt(fan1))
    fan2 = num_pair * dim_size
    w2 = jax.random.uniform(k3, (num_results, num_pair * dim_size), jnp.float32,
                            -1.0 / jnp.sqrt(fan2), 1.0 / jnp.sqrt(fan2))
    b2 = jax.random.uniform(k4, (num_results,), jnp.float32,
                            -1.0 / jnp.sqrt(fan2), 1.0 / jnp.sqrt(fan2))
    return dict(w1=w1, b1=b1, w2=w2, b2=b2)


def prepare_params(params, num_items, dtype=jnp.float32):
    """One-time offline fold of (pairwise_layer, classify_layer) into one matmul.

    Exact because the PyTorch module has no nonlinearity between the two Linears.
    Pass dtype=jnp.bfloat16 on v6e/v7x for 2x MXU throughput / half the weight bytes
    (accumulation in the kernel stays f32).
    """
    hp = jax.lax.Precision.HIGHEST            # offline; keep the fold itself f32-exact
    w1, b1, w2, b2 = params["w1"], params["b1"], params["w2"], params["b2"]
    dim = w1.shape[0]
    pairs = _pair_list(num_items)
    num_pair = len(pairs)
    num_results = w2.shape[0]

    w1a_t = w1[:, :dim].T                     # (D, D)
    w1b_t = w1[:, dim:].T                     # (D, D)
    g = w2.T.reshape(num_pair, dim, num_results)   # G_p = W2[:, p*D:(p+1)*D].T

    blocks = []
    for item in range(num_items):
        a_i = sum(g[p] for p, (i, _) in enumerate(pairs) if i == item)
        b_i = sum(g[p] for p, (_, j) in enumerate(pairs) if j == item)
        blocks.append(jnp.dot(w1a_t, a_i, precision=hp)
                      + jnp.dot(w1b_t, b_i, precision=hp))
    w_eff = jnp.concatenate(blocks, axis=0)                    # (N*D, R)
    b_eff = jnp.dot(b1, g.sum(axis=0), precision=hp) + b2      # (R,)

    # Pad the result (lane) dimension to a multiple of 128 so the kernel's output
    # store is unmasked / lane-dense.  Padding is sliced off in the wrapper.
    r_pad = ((num_results + 127) // 128) * 128
    pad = r_pad - num_results
    w_eff = jnp.pad(w_eff, ((0, 0), (0, pad)))
    b_eff = jnp.pad(b_eff, (0, pad))

    return dict(
        w_eff=w_eff.astype(dtype),                 # (N*D, R_pad)
        b_eff=b_eff.reshape(1, -1).astype(jnp.float32),  # (1, R_pad) — VPU add in f32
    )


# ---------------------------------------------------------------------------
# Forward
# ---------------------------------------------------------------------------
@functools.partial(jax.jit, static_argnames=("num_items",))
def local_sorter_forward(prepped, embeds, num_items):
    batch, n_items, dim = embeds.shape
    assert n_items == num_items
    num_results = _num_results(num_items)
    r_pad = prepped["b_eff"].shape[-1]

    # Free row-major collapse (no transpose, no copy): item i lives at columns
    # i*D:(i+1)*D, which is exactly the layout W_eff was built for.
    x = embeds.reshape(batch, num_items * dim)

    vmem = pltpu.MemorySpace.VMEM
    out = pl.pallas_call(
        _sorter_kernel,
        out_shape=jax.ShapeDtypeStruct((batch, r_pad), embeds.dtype),
        in_specs=[pl.BlockSpec(memory_space=vmem)] * 3,
        out_specs=pl.BlockSpec(memory_space=vmem),
    )(x, prepped["w_eff"], prepped["b_eff"])

    return out[:, :num_results]


# ---------------------------------------------------------------------------
# Pure-JAX reference (mirrors the PyTorch module exactly) for correctness check
# ---------------------------------------------------------------------------
def reference_forward(params, embeds, num_items):
    batch_size, _, embed_dim = embeds.shape
    pairs = _pair_list(num_items)
    idx_i = jnp.array([p[0] for p in pairs], dtype=jnp.int32)
    idx_j = jnp.array([p[1] for p in pairs], dtype=jnp.int32)
    num_pair = len(pairs)
    rep_1 = embeds[:, idx_i, :]
    rep_2 = embeds[:, idx_j, :]
    combined = jnp.concatenate([rep_1, rep_2], axis=-1).reshape(
        batch_size * num_pair, 2 * embed_dim)
    h = combined @ params["w1"].T + params["b1"]
    h = h.reshape(batch_size, num_pair * embed_dim)
    return h @ params["w2"].T + params["b2"]


if __name__ == "__main__":
    batch_size = 2
    num_items = 4     # -> num_pair = 12, num_results = 4! = 24
    dim_size = 32

    key = jax.random.PRNGKey(0)
    k_param, k_x = jax.random.split(key)
    params = init_params(k_param, dim_size, num_items)
    prepped = prepare_params(params, num_items)     # dtype=jnp.bfloat16 on v6e/v7x at scale
    embeds = jax.random.normal(k_x, (batch_size, num_items, dim_size), jnp.float32)

    out = local_sorter_forward(prepped, embeds, num_items)
    out = jax.block_until_ready(out)

    ref = reference_forward(params, embeds, num_items)
    assert out.shape == (batch_size, 24), out.shape
    # Tolerance covers TPU default matmul precision plus the benign reassociation
    # introduced by the exact algebraic fold of the two linear layers.
    assert jnp.allclose(out, ref, atol=1e-2, rtol=1e-2), "mismatch vs reference"

    print("KERNEL_OK")
</pallas_src>

<mosaic_0001>
module attributes {stable_mosaic.version = 11 : i64} {
  func.func @_sorter_kernel(%arg0: memref<2x128xf32, #tpu.memory_space<vmem>>, %arg1: memref<128x128xf32, #tpu.memory_space<vmem>>, %arg2: memref<1x128xf32, #tpu.memory_space<vmem>>, %arg3: memref<2x128xf32, #tpu.memory_space<vmem>>) attributes {dimension_semantics = [], scalar_prefetch = 0 : i64, scratch_operands = 0 : i64, tpu.core_type = #tpu.core_type<tc>} {
    %c0 = arith.constant 0 : index
    %c0_0 = arith.constant 0 : index
    %0 = vector.load %arg1[%c0, %c0_0] : memref<128x128xf32, #tpu.memory_space<vmem>>, vector<128x128xf32>
    %c0_1 = arith.constant 0 : index
    %c0_2 = arith.constant 0 : index
    %1 = vector.load %arg0[%c0_1, %c0_2] : memref<2x128xf32, #tpu.memory_space<vmem>>, vector<2x128xf32>
    %cst = arith.constant dense<0.000000e+00> : vector<2x128xf32>
    %2 = tpu.matmul %1, %0, %cst {dimension_numbers = #tpu.dot_dimension_numbers<[1], [0], [0], [1], [0, 0, 1, 1], [], []>} : vector<2x128xf32>, vector<128x128xf32>, vector<2x128xf32> -> vector<2x128xf32>
    %c0_3 = arith.constant 0 : index
    %c0_4 = arith.constant 0 : index
    %3 = vector.load %arg2[%c0_3, %c0_4] : memref<1x128xf32, #tpu.memory_space<vmem>>, vector<1x128xf32>
    %4 = vector.broadcast %3 : vector<1x128xf32> to vector<2x128xf32>
    %5 = arith.addf %2, %4 : vector<2x128xf32>
    %c0_5 = arith.constant 0 : index
    %c0_6 = arith.constant 0 : index
    %6 = vector.load %arg3[%c0_5, %c0_6] : memref<2x128xf32, #tpu.memory_space<vmem>>, vector<2x128xf32>
    tpu.vector_store %arg3[%c0_5, %c0_6], %5 {strides = array<i32>} : memref<2x128xf32, #tpu.memory_space<vmem>>, vector<2x128xf32>,
    return
  }
}

</mosaic_0001>

<bundles_post_ra>
// kernel: local_sorter_forward.1
= control target key start
LH: loop header
LB: loop body
LE: loop exit
PB: predicated region body
PF: predicated region fallthrough
CT: control target
= control target key end

     0   :  { %8 = vsyncpa [#allocation3], 0  ;;  %s183_s0 = inlined_call_operand.vmem [shape: f32[2,128], index: 0, kind: input, shape index: {}]   ;;  %s184_s1 = inlined_call_operand.hbm [shape: f32[128,128], index: 1, kind: input, shape index: {}]   ;;  %s185_s2 = inlined_call_operand.vmem [shape: f32[1,128], index: 2, kind: input, shape index: {}]   ;;  %s186_s3 = inlined_call_operand.hbm [shape: f32[2,128], index: 3, kind: output, shape index: {}]  }
   0x1   :  { %9 = vsyncpa [#allocation4], 0  ;;  %s16_s14 = sshll.u32 %s184_s1, 4  ;;  %s147_s15 = smov [#allocation2]   ;;  %s17_s14 = int_to_ptr.hbm [resolvable:$true] %s16_s14 }
   0x2   :  { %s18_s16 = sshll.u32 %s147_s15, 4  ;;  %s148_s17 = smov 128   ;;  %s19_s16 = int_to_ptr.vmem [resolvable:$true] %s18_s16 }
   0x3   :  { %s149_s18 = smov 8  }
   0x4   :  { %24 = dma.hbm_to_vmem [thread:$0]  %s17_s14, 2048, %s19_s16, [#allocation3], %s148_s17, %s148_s17, %s149_s18  }
   0x5   :  { %143 = dma.done.wait [#allocation3], 2048  }
   0x6   :  { %144 = vsyncadd [#allocation3], 4294965248  ;;  %v46_v0 = vld [vmem:[#allocation2 + $0x78] sm:$0xff]  ;;  %v45_v1 = vld [vmem:[#allocation2 + $0x70] sm:$0xff]  ;;  %s150_s22 = smov [#allocation5]   ;;  %s80_s26 = sshll.u32 %s186_s3, 4  ;;  %s81_s26 = int_to_ptr.hbm [resolvable:$true] %s80_s26 }
   0x7   :  { %52 = vmatpush.msra.mxu0 %v46_v0  ;;  %v44_v2 = vld [vmem:[#allocation2 + $0x68] sm:$0xff]  ;;  %v43_v3 = vld [vmem:[#allocation2 + $0x60] sm:$0xff]  ;;  %v42_v4 = vld [vmem:[#allocation2 + $0x58] sm:$0xff]  ;;  %s78_s23 = sshll.u32 %s150_s22, 4  ;;  %s79_s23 = int_to_ptr.vmem [resolvable:$true] %s78_s23 }
   0x8   :  { %v41_v5 = vld [vmem:[#allocation2 + $0x50] sm:$0xff]  ;;  %v40_v6 = vld [vmem:[#allocation2 + $0x48] sm:$0xff]  ;;  %v39_v7 = vld [vmem:[#allocation2 + $0x40] sm:$0xff] }
   0x9   :  { %53 = vmatpush.msra.mxu0 %v45_v1  ;;  %v38_v8 = vld [vmem:[#allocation2 + $0x38] sm:$0xff]  ;;  %v37_v9 = vld [vmem:[#allocation2 + $0x30] sm:$0xff]  ;;  %v36_v10 = vld [vmem:[#allocation2 + $0x28] sm:$0xff] }
   0xa   :  { %v35_v11 = vld [vmem:[#allocation2 + $0x20] sm:$0xff]  ;;  %v34_v12 = vld [vmem:[#allocation2 + $0x18] sm:$0xff]  ;;  %v33_v13 = vld [vmem:[#allocation2 + $0x10] sm:$0xff] }
   0xb   :  { %54 = vmatpush.msra.mxu0 %v44_v2  ;;  %v32_v14 = vld [vmem:[#allocation2 + $0x8] sm:$0xff]  ;;  %v31_v15 = vld [vmem:[#allocation2] sm:$0xff] }
   0xc   :  { %v47_v16 = vld [vmem:[%s183_s0] sm:$0x3] }
   0xd   :  { %55 = vmatpush.msra.mxu0 %v43_v3  ;;  %v94_v17 = vld [vmem:[%s185_s2] ss:$0 sm:$0xff] }
   0xf   :  { %56 = vmatpush.msra.mxu0 %v42_v4 }
  0x11   :  { %57 = vmatpush.msra.mxu0 %v41_v5 }
  0x13   :  { %58 = vmatpush.msra.mxu0 %v40_v6 }
  0x15   :  { %59 = vmatpush.msra.mxu0 %v39_v7 }
  0x17   :  { %60 = vmatpush.msra.mxu0 %v38_v8 }
  0x19   :  { %61 = vmatpush.msra.mxu0 %v37_v9 }
  0x1b   :  { %62 = vmatpush.msra.mxu0 %v36_v10 }
  0x1d   :  { %63 = vmatpush.msra.mxu0 %v35_v11 }
  0x1f   :  { %64 = vmatpush.msra.mxu0 %v34_v12 }
  0x21   :  { %65 = vmatpush.msra.mxu0 %v33_v13 }
  0x23   :  { %66 = vmatpush.msra.mxu0 %v32_v14 }
  0x25   :  { %67 = vmatpush.msra.mxu0 %v31_v15 }
  0x26   :  { %68 = vmatmul.f32.vlgmr.msra.gmra.mxu0 %v47_v16 }
  0xa3   :  { %v69_v18 = vpop.f32.mrf.mxu0 }
  0xa4   :  { %v70_v19 = vadd.f32 %v94_v17, %v69_v18 }
  0xa6   :  { %72 = vst [vmem:[#allocation5] sm:$0x3] %v70_v19 }
  0xa7   :  { %83 = dma.vmem_to_hbm [thread:$0]  %s79_s23, 32, %s81_s26, [#allocation4]  }
  0xa8   :  { %145 = dma.done.wait [#allocation4], 32  }
  0xa9   :  { %146 = vsyncadd [#allocation4], 4294967264 }
  0xaa   :  { %88 = vsyncpa [#allocation3], 1 }
  0xab   :  { %89 = vsyncpa [#allocation4], 1 }

</bundles_post_ra>
